<compile_context>
chip_gen: v7x
topology: tpu7x:2x2x1
jax: 0.10.0
libtpu: 0.0.40
codegen_flags: <defaults>
</compile_context>

<pallas_src>
import jax
import jax.numpy as jnp
from jax.experimental import pallas as pl
from jax.experimental.pallas import tpu as pltpu

# ----------------------- model hyper-parameters (small) -----------------------
NUM_SENSORS = 4
SEQ_LEN = 16
CNN_FILTERS = [8, 8]
KERNEL_SIZE = 3
POOL_SIZE = 2
FORCE_REG = True          # -> force_reg_head (output dim 1)
LOC_CLASS = True          # -> loc_class_head (output dim nx*ny)
GRID_RES = (4, 4)
NUM_BINS = GRID_RES[0] * GRID_RES[1]
LATENT_DIM = 32
HEAD_HIDDEN_DIM = 16
HEAD_HIDDEN_LAYERS = 1    # kernel implements exactly one hidden layer per head
BATCH = 2
BN_EPS = 1e-5

C = CNN_FILTERS[0]        # channel width throughout the CNN encoder
K = KERNEL_SIZE
P = (K - 1) // 2          # 'same' padding for odd kernel
LANE = 128                # lane width; also the padded merged-head output width

# ----------------------------- packed weight slab layout -----------------------------
# Every parameter lives in one (rows, 128) f32 slab; each entry starts at a sublane
# (multiple-of-8) row offset so in-kernel loads are aligned.
_PARAM_SHAPES = (
    ("proj_w", (NUM_SENSORS, C)),
    ("proj_b", (1, C)),
    ("rb1_w1", (K * C, C)), ("rb1_s1", (1, C)), ("rb1_b1", (1, C)),
    ("rb1_w2", (K * C, C)), ("rb1_s2", (1, C)), ("rb1_b2", (1, C)),
    ("rb2_w1", (K * C, C)), ("rb2_s1", (1, C)), ("rb2_b1", (1, C)),
    ("rb2_w2", (K * C, C)), ("rb2_s2", (1, C)), ("rb2_b2", (1, C)),
    ("fc_w", (C, LATENT_DIM)), ("fc_b", (1, LATENT_DIM)),
    ("head_w1", (LATENT_DIM, 2 * HEAD_HIDDEN_DIM)),
    ("head_b1", (1, 2 * HEAD_HIDDEN_DIM)),
    ("head_w2", (2 * HEAD_HIDDEN_DIM, LANE)),   # merged loc(0:16) + force(16) heads
    ("head_b2", (1, LANE)),
)


def _build_layout():
    layout, row = {}, 0
    for name, shape in _PARAM_SHAPES:
        layout[name] = (row, shape)
        row += ((shape[0] + 7) // 8) * 8      # round footprint up to sublane multiple
    return layout, row


_LAYOUT, _SLAB_ROWS = _build_layout()


# ------------------------------ fused forward kernel ------------------------------
def _fused_forward_kernel(x_ref, slab_ref, out_ref):
    def param(name):
        row, (nr, nc) = _LAYOUT[name]
        return slab_ref[row:row + nr, 0:nc]        # static slice: one aligned VMEM load

    def roll_rows(v, shift):
        # static, positive-modulo sublane rotation (XLU slot, stays in vregs)
        return pltpu.roll(v, shift % v.shape[0], axis=0)

    def pos_in_item(shape, l_item):
        rows = jax.lax.broadcasted_iota(jnp.int32, shape, 0)
        if l_item & (l_item - 1) == 0:             # l_item is a power of two here
            return rows & (l_item - 1)
        return rows % l_item

    def conv_bn(h, w, s, b, l_item, relu):
        # Conv1d(C->C, K=3, padding='same') + folded BatchNorm (+ optional ReLU),
        # whole batch at once on the flattened (B*l_item, C) layout.
        pos = pos_in_item(h.shape, l_item)
        left = jnp.where(pos == 0, 0.0, roll_rows(h, 1))              # x[l-1] (padded 0)
        right = jnp.where(pos == l_item - 1, 0.0, roll_rows(h, -1))   # x[l+1] (padded 0)
        xcat = jnp.concatenate([left, h, right], axis=1)              # im2col (R, K*C)
        y = jnp.dot(xcat, w, preferred_element_type=jnp.float32) * s + b
        return jnp.maximum(y, 0.0) if relu else y

    def select_rows(v, stride):
        # Compact rows 0, stride, 2*stride, ... with a tiny selection matmul
        # (MXU path; avoids strided sublane gathers / scratch round trips).
        r_in = v.shape[0]
        r_out = r_in // stride
        i = jax.lax.broadcasted_iota(jnp.int32, (r_out, r_in), 0)
        j = jax.lax.broadcasted_iota(jnp.int32, (r_out, r_in), 1)
        sel = (j == i * stride).astype(jnp.float32)
        return jnp.dot(sel, v, preferred_element_type=jnp.float32)

    def maxpool_rows(v, pool):
        # MaxPool1d(pool) over per-item rows (item length is even, so pairs never
        # cross item boundaries and the flattened item-major layout is preserved).
        m = v
        for sft in range(1, pool):
            m = jnp.maximum(m, roll_rows(v, -sft))
        return select_rows(m, pool)

    def resblock(h, pfx, l_item):
        t = conv_bn(h, param(pfx + "_w1"), param(pfx + "_s1"), param(pfx + "_b1"),
                    l_item, relu=True)
        o = conv_bn(t, param(pfx + "_w2"), param(pfx + "_s2"), param(pfx + "_b2"),
                    l_item, relu=False)
        return jnp.maximum(o + h, 0.0)             # residual + ReLU (Dropout == id)

    # ---- CNN encoder (batch fused into matmul rows) ----
    x = x_ref[...]                                                      # (B*L0, S)
    h = jnp.dot(x, param("proj_w"),
                preferred_element_type=jnp.float32) + param("proj_b")   # 1x1 conv
    h = maxpool_rows(resblock(h, "rb1", SEQ_LEN), POOL_SIZE)            # (B*L0/2, C)
    l1 = SEQ_LEN // POOL_SIZE
    h = resblock(h, "rb2", l1)                                          # (B*l1, C)

    # ResBlock-2's MaxPool1d(2) followed by AdaptiveMaxPool1d(1) == per-item max over
    # all l1 rows: log2 roll/max tree, then pick row 0 of each item with a selection
    # matmul (l1 is a power of two).
    m = h
    sft = 1
    while sft < l1:
        m = jnp.maximum(m, roll_rows(m, -sft))
        sft *= 2
    feat = select_rows(m, l1)                                           # (B, C)

    # ---- shared FC + both heads (hidden layers fused; output layers merged) ----
    latent = jnp.maximum(
        jnp.dot(feat, param("fc_w"), preferred_element_type=jnp.float32)
        + param("fc_b"), 0.0)                                           # (B, latent)
    hidden = jnp.maximum(
        jnp.dot(latent, param("head_w1"), preferred_element_type=jnp.float32)
        + param("head_b1"), 0.0)                                        # (B, 2H)
    out_ref[...] = (jnp.dot(hidden, param("head_w2"),
                            preferred_element_type=jnp.float32)
                    + param("head_b2")).astype(out_ref.dtype)           # (B, 128)


def impact_predictor_forward(x, slab):
    """x: (B, seq_len, num_sensors) f32; slab: packed weights. Returns (loc, force)."""
    B, L, S = x.shape
    assert L == SEQ_LEN and S == NUM_SENSORS
    out = pl.pallas_call(
        _fused_forward_kernel,
        out_shape=jax.ShapeDtypeStruct((B, LANE), jnp.float32),
    )(x.reshape(B * L, S).astype(jnp.float32), slab)
    return out[:, :NUM_BINS], out[:, NUM_BINS:NUM_BINS + 1]


# ------------------------------ parameter construction ------------------------------
def init_params(key):
    keys = iter(jax.random.split(key, 64))

    def nrm(shape, s=0.1):
        return s * jax.random.normal(next(keys), shape, dtype=jnp.float32)

    def bn_stats(c):
        gamma = 1.0 + nrm((c,))
        beta = nrm((c,))
        mean = nrm((c,))
        var = 1.0 + jnp.abs(nrm((c,)))
        return gamma, beta, mean, var

    def fold(conv_bias, gamma, beta, mean, var):
        scale = gamma / jnp.sqrt(var + BN_EPS)
        return scale, (conv_bias - mean) * scale + beta

    t = {}

    # cnn_encoder: Conv1d(num_sensors -> 8, k=1) projection, then two ResBlock(8)
    # (in_ch == out_ch for the second stage, so no extra projection).
    proj_w = nrm((C, NUM_SENSORS, 1))                    # torch Conv1d weight (out,in,1)
    t["proj_w"] = jnp.transpose(proj_w[:, :, 0])         # (in, out)
    t["proj_b"] = nrm((C,)).reshape(1, C)

    def resblock_tensors(pfx):
        for i in (1, 2):
            w = nrm((C, C, K))                           # torch (out, in, k)
            b = nrm((C,))
            s, bb = fold(b, *bn_stats(C))
            # im2col layout: (K*in, out), tap-major (tap 0 multiplies x[l-1]).
            t[f"{pfx}_w{i}"] = jnp.transpose(w, (2, 1, 0)).reshape(K * C, C)
            t[f"{pfx}_s{i}"] = s.reshape(1, C)
            t[f"{pfx}_b{i}"] = bb.reshape(1, C)

    resblock_tensors("rb1")
    resblock_tensors("rb2")

    # fc_shared: Linear(C -> latent) + ReLU (+ Dropout == identity)
    t["fc_w"] = jnp.transpose(nrm((LATENT_DIM, C)))      # (in, out)
    t["fc_b"] = nrm((LATENT_DIM,)).reshape(1, LATENT_DIM)

    def head(out_dim):
        # One hidden layer: Linear + BatchNorm1d (eval, folded) + ReLU, then Linear.
        w1 = nrm((HEAD_HIDDEN_DIM, LATENT_DIM))
        b1 = nrm((HEAD_HIDDEN_DIM,))
        gamma, beta, mean, var = bn_stats(HEAD_HIDDEN_DIM)
        scale = gamma / jnp.sqrt(var + BN_EPS)
        w1f = jnp.transpose(w1) * scale[None, :]         # (latent, hidden)
        b1f = (b1 - mean) * scale + beta
        w2 = jnp.transpose(nrm((out_dim, HEAD_HIDDEN_DIM)))   # (hidden, out)
        b2 = nrm((out_dim,))
        return w1f, b1f, w2, b2

    # loc_class=True -> classification head; force_reg=True -> regression head.
    lw1, lb1, lw2, lb2 = head(NUM_BINS)
    fw1, fb1, fw2, fb2 = head(1)
    H = HEAD_HIDDEN_DIM

    # Fuse both head hidden layers into one matmul; merge both output layers into one
    # block-diagonal, lane-padded (2H, 128) weight so the kernel does a single matmul
    # and a single lane-dense output store.
    t["head_w1"] = jnp.concatenate([lw1, fw1], axis=1)                   # (latent, 2H)
    t["head_b1"] = jnp.concatenate([lb1, fb1]).reshape(1, 2 * H)
    w2 = jnp.zeros((2 * H, LANE), jnp.float32)
    w2 = w2.at[:H, :NUM_BINS].set(lw2).at[H:, NUM_BINS:NUM_BINS + 1].set(fw2)
    b2 = jnp.zeros((1, LANE), jnp.float32)
    b2 = b2.at[0, :NUM_BINS].set(lb2).at[0, NUM_BINS].set(fb2[0])
    t["head_w2"] = w2
    t["head_b2"] = b2

    # Pack everything into ONE lane-dense slab -> a single HBM->VMEM DMA at kernel entry.
    slab = jnp.zeros((_SLAB_ROWS, LANE), jnp.float32)
    for name, shape in _PARAM_SHAPES:
        row, _ = _LAYOUT[name]
        slab = slab.at[row:row + shape[0], 0:shape[1]].set(
            t[name].astype(jnp.float32).reshape(shape))
    return slab, t


# ------------------------------ pure-JAX reference ------------------------------
def reference_forward(x, t):
    """Eval-mode reference using the same folded/packed tensors (outside Pallas)."""
    B = x.shape[0]
    h = x.astype(jnp.float32) @ t["proj_w"] + t["proj_b"]                # (B, L, C)

    def conv_bn(h, w, s, b, relu):
        Lc = h.shape[1]
        pad = jnp.pad(h, ((0, 0), (P, P), (0, 0)))
        acc = jnp.zeros((B, Lc, C), jnp.float32)
        for k in range(K):
            acc = acc + pad[:, k:k + Lc, :] @ w[k * C:(k + 1) * C]
        y = acc * s + b
        return jnp.maximum(y, 0.0) if relu else y

    def resblock(h, pfx):
        o = conv_bn(h, t[f"{pfx}_w1"], t[f"{pfx}_s1"], t[f"{pfx}_b1"], True)
        o = conv_bn(o, t[f"{pfx}_w2"], t[f"{pfx}_s2"], t[f"{pfx}_b2"], False)
        o = jnp.maximum(o + h, 0.0)
        Lc = o.shape[1]
        return o.reshape(B, Lc // POOL_SIZE, POOL_SIZE, C).max(axis=2)

    h = resblock(h, "rb1")
    h = resblock(h, "rb2")
    feat = h.max(axis=1)                                                 # AdaptiveMaxPool1d(1)
    latent = jnp.maximum(feat @ t["fc_w"] + t["fc_b"], 0.0)
    hidden = jnp.maximum(latent @ t["head_w1"] + t["head_b1"], 0.0)
    out = hidden @ t["head_w2"] + t["head_b2"]
    return out[:, :NUM_BINS], out[:, NUM_BINS:NUM_BINS + 1]


if __name__ == "__main__":
    key = jax.random.PRNGKey(0)
    k_params, k_x = jax.random.split(key)
    slab, tensors = init_params(k_params)
    x = jax.random.normal(k_x, (BATCH, SEQ_LEN, NUM_SENSORS), dtype=jnp.float32)

    loc_out, force_out = jax.jit(impact_predictor_forward)(x, slab)
    jax.block_until_ready((loc_out, force_out))

    assert loc_out.shape == (BATCH, NUM_BINS)
    assert force_out.shape == (BATCH, 1)
    assert bool(jnp.all(jnp.isfinite(loc_out))) and bool(jnp.all(jnp.isfinite(force_out)))

    ref_loc, ref_force = reference_forward(x, tensors)
    assert bool(jnp.allclose(loc_out, ref_loc, atol=1e-4, rtol=1e-4))
    assert bool(jnp.allclose(force_out, ref_force, atol=1e-4, rtol=1e-4))
    print("KERNEL_OK")
</pallas_src>

<mosaic_0001>
module attributes {stable_mosaic.version = 11 : i64} {
  func.func @_fused_forward_kernel(%arg0: memref<32x4xf32, #tpu.memory_space<vmem>>, %arg1: memref<272x128xf32, #tpu.memory_space<vmem>>, %arg2: memref<2x128xf32, #tpu.memory_space<vmem>>) attributes {dimension_semantics = [], scalar_prefetch = 0 : i64, scratch_operands = 0 : i64, tpu.core_type = #tpu.core_type<tc>} {
    %c0 = arith.constant 0 : index
    %c0_0 = arith.constant 0 : index
    %0 = vector.load %arg0[%c0, %c0_0] : memref<32x4xf32, #tpu.memory_space<vmem>>, vector<32x4xf32>
    %c0_1 = arith.constant 0 : index
    %c0_2 = arith.constant 0 : index
    %1 = vector.load %arg1[%c0_1, %c0_2] : memref<272x128xf32, #tpu.memory_space<vmem>>, vector<4x8xf32>
    %cst = arith.constant dense<0.000000e+00> : vector<32x8xf32>
    %2 = tpu.matmul %0, %1, %cst {dimension_numbers = #tpu.dot_dimension_numbers<[1], [0], [0], [1], [0, 0, 1, 1], [], []>} : vector<32x4xf32>, vector<4x8xf32>, vector<32x8xf32> -> vector<32x8xf32>
    %c8 = arith.constant 8 : index
    %c0_3 = arith.constant 0 : index
    %3 = vector.load %arg1[%c8, %c0_3] : memref<272x128xf32, #tpu.memory_space<vmem>>, vector<1x8xf32>
    %4 = vector.broadcast %3 : vector<1x8xf32> to vector<32x8xf32>
    %5 = arith.addf %2, %4 : vector<32x8xf32>
    %c16 = arith.constant 16 : index
    %c0_4 = arith.constant 0 : index
    %6 = vector.load %arg1[%c16, %c0_4] : memref<272x128xf32, #tpu.memory_space<vmem>>, vector<24x8xf32>
    %c40 = arith.constant 40 : index
    %c0_5 = arith.constant 0 : index
    %7 = vector.load %arg1[%c40, %c0_5] : memref<272x128xf32, #tpu.memory_space<vmem>>, vector<1x8xf32>
    %c48 = arith.constant 48 : index
    %c0_6 = arith.constant 0 : index
    %8 = vector.load %arg1[%c48, %c0_6] : memref<272x128xf32, #tpu.memory_space<vmem>>, vector<1x8xf32>
    %9 = tpu.iota {dimensions = array<i32: 0>} : vector<32x8xi32>
    %c15_i32 = arith.constant 15 : i32
    %10 = vector.broadcast %c15_i32 : i32 to vector<32x8xi32>
    %11 = arith.andi %9, %10 : vector<32x8xi32>
    %c0_i32 = arith.constant 0 : i32
    %12 = vector.broadcast %c0_i32 : i32 to vector<32x8xi32>
    %13 = arith.cmpi eq, %11, %12 : vector<32x8xi32>
    %c1_i32 = arith.constant 1 : i32
    %14 = tpu.dynamic_rotate %5 by %c1_i32 dim 0 : vector<32x8xf32>, i32 -> vector<32x8xf32>
    %cst_7 = arith.constant 0.000000e+00 : f32
    %15 = vector.broadcast %cst_7 : f32 to vector<32x8xf32>
    %16 = arith.select %13, %15, %14 : vector<32x8xi1>, vector<32x8xf32>
    %c15_i32_8 = arith.constant 15 : i32
    %17 = vector.broadcast %c15_i32_8 : i32 to vector<32x8xi32>
    %18 = arith.cmpi eq, %11, %17 : vector<32x8xi32>
    %c31_i32 = arith.constant 31 : i32
    %19 = tpu.dynamic_rotate %5 by %c31_i32 dim 0 : vector<32x8xf32>, i32 -> vector<32x8xf32>
    %cst_9 = arith.constant 0.000000e+00 : f32
    %20 = vector.broadcast %cst_9 : f32 to vector<32x8xf32>
    %21 = arith.select %18, %20, %19 : vector<32x8xi1>, vector<32x8xf32>
    %22 = tpu.concatenate %16, %5, %21 in 1 : vector<32x8xf32>, vector<32x8xf32>, vector<32x8xf32> -> vector<32x24xf32>
    %cst_10 = arith.constant dense<0.000000e+00> : vector<32x8xf32>
    %23 = tpu.matmul %22, %6, %cst_10 {dimension_numbers = #tpu.dot_dimension_numbers<[1], [0], [0], [1], [0, 0, 1, 1], [], []>} : vector<32x24xf32>, vector<24x8xf32>, vector<32x8xf32> -> vector<32x8xf32>
    %24 = vector.broadcast %7 : vector<1x8xf32> to vector<32x8xf32>
    %25 = arith.mulf %23, %24 : vector<32x8xf32>
    %26 = vector.broadcast %8 : vector<1x8xf32> to vector<32x8xf32>
    %27 = arith.addf %25, %26 : vector<32x8xf32>
    %cst_11 = arith.constant 0.000000e+00 : f32
    %28 = vector.broadcast %cst_11 : f32 to vector<32x8xf32>
    %29 = arith.maximumf %27, %28 : vector<32x8xf32>
    %c56 = arith.constant 56 : index
    %c0_12 = arith.constant 0 : index
    %30 = vector.load %arg1[%c56, %c0_12] : memref<272x128xf32, #tpu.memory_space<vmem>>, vector<24x8xf32>
    %c80 = arith.constant 80 : index
    %c0_13 = arith.constant 0 : index
    %31 = vector.load %arg1[%c80, %c0_13] : memref<272x128xf32, #tpu.memory_space<vmem>>, vector<1x8xf32>
    %c88 = arith.constant 88 : index
    %c0_14 = arith.constant 0 : index
    %32 = vector.load %arg1[%c88, %c0_14] : memref<272x128xf32, #tpu.memory_space<vmem>>, vector<1x8xf32>
    %33 = tpu.iota {dimensions = array<i32: 0>} : vector<32x8xi32>
    %c15_i32_15 = arith.constant 15 : i32
    %34 = vector.broadcast %c15_i32_15 : i32 to vector<32x8xi32>
    %35 = arith.andi %33, %34 : vector<32x8xi32>
    %c0_i32_16 = arith.constant 0 : i32
    %36 = vector.broadcast %c0_i32_16 : i32 to vector<32x8xi32>
    %37 = arith.cmpi eq, %35, %36 : vector<32x8xi32>
    %c1_i32_17 = arith.constant 1 : i32
    %38 = tpu.dynamic_rotate %29 by %c1_i32_17 dim 0 : vector<32x8xf32>, i32 -> vector<32x8xf32>
    %cst_18 = arith.constant 0.000000e+00 : f32
    %39 = vector.broadcast %cst_18 : f32 to vector<32x8xf32>
    %40 = arith.select %37, %39, %38 : vector<32x8xi1>, vector<32x8xf32>
    %c15_i32_19 = arith.constant 15 : i32
    %41 = vector.broadcast %c15_i32_19 : i32 to vector<32x8xi32>
    %42 = arith.cmpi eq, %35, %41 : vector<32x8xi32>
    %c31_i32_20 = arith.constant 31 : i32
    %43 = tpu.dynamic_rotate %29 by %c31_i32_20 dim 0 : vector<32x8xf32>, i32 -> vector<32x8xf32>
    %cst_21 = arith.constant 0.000000e+00 : f32
    %44 = vector.broadcast %cst_21 : f32 to vector<32x8xf32>
    %45 = arith.select %42, %44, %43 : vector<32x8xi1>, vector<32x8xf32>
    %46 = tpu.concatenate %40, %29, %45 in 1 : vector<32x8xf32>, vector<32x8xf32>, vector<32x8xf32> -> vector<32x24xf32>
    %cst_22 = arith.constant dense<0.000000e+00> : vector<32x8xf32>
    %47 = tpu.matmul %46, %30, %cst_22 {dimension_numbers = #tpu.dot_dimension_numbers<[1], [0], [0], [1], [0, 0, 1, 1], [], []>} : vector<32x24xf32>, vector<24x8xf32>, vector<32x8xf32> -> vector<32x8xf32>
    %48 = vector.broadcast %31 : vector<1x8xf32> to vector<32x8xf32>
    %49 = arith.mulf %47, %48 : vector<32x8xf32>
    %50 = vector.broadcast %32 : vector<1x8xf32> to vector<32x8xf32>
    %51 = arith.addf %49, %50 : vector<32x8xf32>
    %52 = arith.addf %51, %5 : vector<32x8xf32>
    %cst_23 = arith.constant 0.000000e+00 : f32
    %53 = vector.broadcast %cst_23 : f32 to vector<32x8xf32>
    %54 = arith.maximumf %52, %53 : vector<32x8xf32>
    %c31_i32_24 = arith.constant 31 : i32
    %55 = tpu.dynamic_rotate %54 by %c31_i32_24 dim 0 : vector<32x8xf32>, i32 -> vector<32x8xf32>
    %56 = arith.maximumf %54, %55 : vector<32x8xf32>
    %57 = tpu.iota {dimensions = array<i32: 0>} : vector<16x32xi32>
    %58 = tpu.iota {dimensions = array<i32: 1>} : vector<16x32xi32>
    %c2_i32 = arith.constant 2 : i32
    %59 = vector.broadcast %c2_i32 : i32 to vector<16x32xi32>
    %60 = arith.muli %57, %59 : vector<16x32xi32>
    %61 = arith.cmpi eq, %58, %60 : vector<16x32xi32>
    %62 = arith.extui %61 : vector<16x32xi1> to vector<16x32xi32>
    %63 = arith.sitofp %62 : vector<16x32xi32> to vector<16x32xf32>
    %cst_25 = arith.constant dense<0.000000e+00> : vector<16x8xf32>
    %64 = tpu.matmul %63, %56, %cst_25 {dimension_numbers = #tpu.dot_dimension_numbers<[1], [0], [0], [1], [0, 0, 1, 1], [], []>} : vector<16x32xf32>, vector<32x8xf32>, vector<16x8xf32> -> vector<16x8xf32>
    %c96 = arith.constant 96 : index
    %c0_26 = arith.constant 0 : index
    %65 = vector.load %arg1[%c96, %c0_26] : memref<272x128xf32, #tpu.memory_space<vmem>>, vector<24x8xf32>
    %c120 = arith.constant 120 : index
    %c0_27 = arith.constant 0 : index
    %66 = vector.load %arg1[%c120, %c0_27] : memref<272x128xf32, #tpu.memory_space<vmem>>, vector<1x8xf32>
    %c128 = arith.constant 128 : index
    %c0_28 = arith.constant 0 : index
    %67 = vector.load %arg1[%c128, %c0_28] : memref<272x128xf32, #tpu.memory_space<vmem>>, vector<1x8xf32>
    %68 = tpu.iota {dimensions = array<i32: 0>} : vector<16x8xi32>
    %c7_i32 = arith.constant 7 : i32
    %69 = vector.broadcast %c7_i32 : i32 to vector<16x8xi32>
    %70 = arith.andi %68, %69 : vector<16x8xi32>
    %c0_i32_29 = arith.constant 0 : i32
    %71 = vector.broadcast %c0_i32_29 : i32 to vector<16x8xi32>
    %72 = arith.cmpi eq, %70, %71 : vector<16x8xi32>
    %c1_i32_30 = arith.constant 1 : i32
    %73 = tpu.dynamic_rotate %64 by %c1_i32_30 dim 0 : vector<16x8xf32>, i32 -> vector<16x8xf32>
    %cst_31 = arith.constant 0.000000e+00 : f32
    %74 = vector.broadcast %cst_31 : f32 to vector<16x8xf32>
    %75 = arith.select %72, %74, %73 : vector<16x8xi1>, vector<16x8xf32>
    %c7_i32_32 = arith.constant 7 : i32
    %76 = vector.broadcast %c7_i32_32 : i32 to vector<16x8xi32>
    %77 = arith.cmpi eq, %70, %76 : vector<16x8xi32>
    %c15_i32_33 = arith.constant 15 : i32
    %78 = tpu.dynamic_rotate %64 by %c15_i32_33 dim 0 : vector<16x8xf32>, i32 -> vector<16x8xf32>
    %cst_34 = arith.constant 0.000000e+00 : f32
    %79 = vector.broadcast %cst_34 : f32 to vector<16x8xf32>
    %80 = arith.select %77, %79, %78 : vector<16x8xi1>, vector<16x8xf32>
    %81 = tpu.concatenate %75, %64, %80 in 1 : vector<16x8xf32>, vector<16x8xf32>, vector<16x8xf32> -> vector<16x24xf32>
    %cst_35 = arith.constant dense<0.000000e+00> : vector<16x8xf32>
    %82 = tpu.matmul %81, %65, %cst_35 {dimension_numbers = #tpu.dot_dimension_numbers<[1], [0], [0], [1], [0, 0, 1, 1], [], []>} : vector<16x24xf32>, vector<24x8xf32>, vector<16x8xf32> -> vector<16x8xf32>
    %83 = vector.broadcast %66 : vector<1x8xf32> to vector<16x8xf32>
    %84 = arith.mulf %82, %83 : vector<16x8xf32>
    %85 = vector.broadcast %67 : vector<1x8xf32> to vector<16x8xf32>
    %86 = arith.addf %84, %85 : vector<16x8xf32>
    %cst_36 = arith.constant 0.000000e+00 : f32
    %87 = vector.broadcast %cst_36 : f32 to vector<16x8xf32>
    %88 = arith.maximumf %86, %87 : vector<16x8xf32>
    %c136 = arith.constant 136 : index
    %c0_37 = arith.constant 0 : index
    %89 = vector.load %arg1[%c136, %c0_37] : memref<272x128xf32, #tpu.memory_space<vmem>>, vector<24x8xf32>
    %c160 = arith.constant 160 : index
    %c0_38 = arith.constant 0 : index
    %90 = vector.load %arg1[%c160, %c0_38] : memref<272x128xf32, #tpu.memory_space<vmem>>, vector<1x8xf32>
    %c168 = arith.constant 168 : index
    %c0_39 = arith.constant 0 : index
    %91 = vector.load %arg1[%c168, %c0_39] : memref<272x128xf32, #tpu.memory_space<vmem>>, vector<1x8xf32>
    %92 = tpu.iota {dimensions = array<i32: 0>} : vector<16x8xi32>
    %c7_i32_40 = arith.constant 7 : i32
    %93 = vector.broadcast %c7_i32_40 : i32 to vector<16x8xi32>
    %94 = arith.andi %92, %93 : vector<16x8xi32>
    %c0_i32_41 = arith.constant 0 : i32
    %95 = vector.broadcast %c0_i32_41 : i32 to vector<16x8xi32>
    %96 = arith.cmpi eq, %94, %95 : vector<16x8xi32>
    %c1_i32_42 = arith.constant 1 : i32
    %97 = tpu.dynamic_rotate %88 by %c1_i32_42 dim 0 : vector<16x8xf32>, i32 -> vector<16x8xf32>
    %cst_43 = arith.constant 0.000000e+00 : f32
    %98 = vector.broadcast %cst_43 : f32 to vector<16x8xf32>
    %99 = arith.select %96, %98, %97 : vector<16x8xi1>, vector<16x8xf32>
    %c7_i32_44 = arith.constant 7 : i32
    %100 = vector.broadcast %c7_i32_44 : i32 to vector<16x8xi32>
    %101 = arith.cmpi eq, %94, %100 : vector<16x8xi32>
    %c15_i32_45 = arith.constant 15 : i32
    %102 = tpu.dynamic_rotate %88 by %c15_i32_45 dim 0 : vector<16x8xf32>, i32 -> vector<16x8xf32>
    %cst_46 = arith.constant 0.000000e+00 : f32
    %103 = vector.broadcast %cst_46 : f32 to vector<16x8xf32>
    %104 = arith.select %101, %103, %102 : vector<16x8xi1>, vector<16x8xf32>
    %105 = tpu.concatenate %99, %88, %104 in 1 : vector<16x8xf32>, vector<16x8xf32>, vector<16x8xf32> -> vector<16x24xf32>
    %cst_47 = arith.constant dense<0.000000e+00> : vector<16x8xf32>
    %106 = tpu.matmul %105, %89, %cst_47 {dimension_numbers = #tpu.dot_dimension_numbers<[1], [0], [0], [1], [0, 0, 1, 1], [], []>} : vector<16x24xf32>, vector<24x8xf32>, vector<16x8xf32> -> vector<16x8xf32>
    %107 = vector.broadcast %90 : vector<1x8xf32> to vector<16x8xf32>
    %108 = arith.mulf %106, %107 : vector<16x8xf32>
    %109 = vector.broadcast %91 : vector<1x8xf32> to vector<16x8xf32>
    %110 = arith.addf %108, %109 : vector<16x8xf32>
    %111 = arith.addf %110, %64 : vector<16x8xf32>
    %cst_48 = arith.constant 0.000000e+00 : f32
    %112 = vector.broadcast %cst_48 : f32 to vector<16x8xf32>
    %113 = arith.maximumf %111, %112 : vector<16x8xf32>
    %c15_i32_49 = arith.constant 15 : i32
    %114 = tpu.dynamic_rotate %113 by %c15_i32_49 dim 0 : vector<16x8xf32>, i32 -> vector<16x8xf32>
    %115 = arith.maximumf %113, %114 : vector<16x8xf32>
    %c14_i32 = arith.constant 14 : i32
    %116 = tpu.dynamic_rotate %115 by %c14_i32 dim 0 : vector<16x8xf32>, i32 -> vector<16x8xf32>
    %117 = arith.maximumf %115, %116 : vector<16x8xf32>
    %c12_i32 = arith.constant 12 : i32
    %118 = tpu.dynamic_rotate %117 by %c12_i32 dim 0 : vector<16x8xf32>, i32 -> vector<16x8xf32>
    %119 = arith.maximumf %117, %118 : vector<16x8xf32>
    %120 = tpu.iota {dimensions = array<i32: 0>} : vector<2x16xi32>
    %121 = tpu.iota {dimensions = array<i32: 1>} : vector<2x16xi32>
    %c8_i32 = arith.constant 8 : i32
    %122 = vector.broadcast %c8_i32 : i32 to vector<2x16xi32>
    %123 = arith.muli %120, %122 : vector<2x16xi32>
    %124 = arith.cmpi eq, %121, %123 : vector<2x16xi32>
    %125 = arith.extui %124 : vector<2x16xi1> to vector<2x16xi32>
    %126 = arith.sitofp %125 : vector<2x16xi32> to vector<2x16xf32>
    %cst_50 = arith.constant dense<0.000000e+00> : vector<2x8xf32>
    %127 = tpu.matmul %126, %119, %cst_50 {dimension_numbers = #tpu.dot_dimension_numbers<[1], [0], [0], [1], [0, 0, 1, 1], [], []>} : vector<2x16xf32>, vector<16x8xf32>, vector<2x8xf32> -> vector<2x8xf32>
    %c176 = arith.constant 176 : index
    %c0_51 = arith.constant 0 : index
    %128 = vector.load %arg1[%c176, %c0_51] : memref<272x128xf32, #tpu.memory_space<vmem>>, vector<8x32xf32>
    %cst_52 = arith.constant dense<0.000000e+00> : vector<2x32xf32>
    %129 = tpu.matmul %127, %128, %cst_52 {dimension_numbers = #tpu.dot_dimension_numbers<[1], [0], [0], [1], [0, 0, 1, 1], [], []>} : vector<2x8xf32>, vector<8x32xf32>, vector<2x32xf32> -> vector<2x32xf32>
    %c184 = arith.constant 184 : index
    %c0_53 = arith.constant 0 : index
    %130 = vector.load %arg1[%c184, %c0_53] : memref<272x128xf32, #tpu.memory_space<vmem>>, vector<1x32xf32>
    %131 = vector.broadcast %130 : vector<1x32xf32> to vector<2x32xf32>
    %132 = arith.addf %129, %131 : vector<2x32xf32>
    %cst_54 = arith.constant 0.000000e+00 : f32
    %133 = vector.broadcast %cst_54 : f32 to vector<2x32xf32>
    %134 = arith.maximumf %132, %133 : vector<2x32xf32>
    %c192 = arith.constant 192 : index
    %c0_55 = arith.constant 0 : index
    %135 = vector.load %arg1[%c192, %c0_55] : memref<272x128xf32, #tpu.memory_space<vmem>>, vector<32x32xf32>
    %cst_56 = arith.constant dense<0.000000e+00> : vector<2x32xf32>
    %136 = tpu.matmul %134, %135, %cst_56 {dimension_numbers = #tpu.dot_dimension_numbers<[1], [0], [0], [1], [0, 0, 1, 1], [], []>} : vector<2x32xf32>, vector<32x32xf32>, vector<2x32xf32> -> vector<2x32xf32>
    %c224 = arith.constant 224 : index
    %c0_57 = arith.constant 0 : index
    %137 = vector.load %arg1[%c224, %c0_57] : memref<272x128xf32, #tpu.memory_space<vmem>>, vector<1x32xf32>
    %138 = vector.broadcast %137 : vector<1x32xf32> to vector<2x32xf32>
    %139 = arith.addf %136, %138 : vector<2x32xf32>
    %cst_58 = arith.constant 0.000000e+00 : f32
    %140 = vector.broadcast %cst_58 : f32 to vector<2x32xf32>
    %141 = arith.maximumf %139, %140 : vector<2x32xf32>
    %c232 = arith.constant 232 : index
    %c0_59 = arith.constant 0 : index
    %142 = vector.load %arg1[%c232, %c0_59] : memref<272x128xf32, #tpu.memory_space<vmem>>, vector<32x128xf32>
    %cst_60 = arith.constant dense<0.000000e+00> : vector<2x128xf32>
    %143 = tpu.matmul %141, %142, %cst_60 {dimension_numbers = #tpu.dot_dimension_numbers<[1], [0], [0], [1], [0, 0, 1, 1], [], []>} : vector<2x32xf32>, vector<32x128xf32>, vector<2x128xf32> -> vector<2x128xf32>
    %c264 = arith.constant 264 : index
    %c0_61 = arith.constant 0 : index
    %144 = vector.load %arg1[%c264, %c0_61] : memref<272x128xf32, #tpu.memory_space<vmem>>, vector<1x128xf32>
    %145 = vector.broadcast %144 : vector<1x128xf32> to vector<2x128xf32>
    %146 = arith.addf %143, %145 : vector<2x128xf32>
    %c0_62 = arith.constant 0 : index
    %c0_63 = arith.constant 0 : index
    %147 = vector.load %arg2[%c0_62, %c0_63] : memref<2x128xf32, #tpu.memory_space<vmem>>, vector<2x128xf32>
    tpu.vector_store %arg2[%c0_62, %c0_63], %146 {strides = array<i32>} : memref<2x128xf32, #tpu.memory_space<vmem>>, vector<2x128xf32>,
    return
  }
}

</mosaic_0001>

<bundles_post_ra>
// kernel: impact_predictor_forward.1
= control target key start
LH: loop header
LB: loop body
LE: loop exit
PB: predicated region body
PF: predicated region fallthrough
CT: control target
= control target key end

     0   :  { %7 = vsyncpa [#allocation3], 0  ;;  %s1512_s9 = smov [#allocation2]   ;;  %s1830_s0 = inlined_call_operand.vmem [shape: f32[32,4], index: 0, kind: input, shape index: {}]   ;;  %s1831_s1 = inlined_call_operand.hbm [shape: f32[272,128], index: 1, kind: input, shape index: {}]   ;;  %s1832_s2 = inlined_call_operand.vmem [shape: f32[2,128], index: 2, kind: output, shape index: {}]  }
   0x1   :  { %s15_s10 = sshll.u32 %s1512_s9, 4  ;;  %s1488_s13 = scalar_lea.hbm %s1831_s1, 4352  ;;  %s16_s10 = int_to_ptr.vmem [resolvable:$true] %s15_s10 }
   0x2   :  { %p1489_p0 = scmp.ne.s32.totalorder %s1831_s1, %s1488_s13  ;;  %p1492_p1 = scmp.lt.u32.totalorder %s1488_s13, %s1831_s1 }
   0x4   :  { %p1494_p2 = pnand %p1492_p1, %p1489_p0 }
   0x6   :  { %1497 = shalt.err (!%p1494_p2)
}
   0x7   :  { %s1498_s18 = scalar_lea.vmem %s16_s10, 4352  ;;  %p1503_p4 = scmp.lt.s32.totalorder %s16_s10, %s16_s10 }
   0x8   :  { %p1499_p3 = scmp.ne.s32.totalorder %s16_s10, %s1498_s18  ;;  %p1504_p5 = scmp.lt.s32.totalorder %s1498_s18, %s1498_s18 }
   0xa   :  { %p1505_p6 = por %p1504_p5, %p1503_p4 }
   0xc   :  { %p1506_p7 = pnand %p1505_p6, %p1499_p3 }
   0xe   :  { %1509 = shalt.err (!%p1506_p7)
}
   0xf   :  { %s1513_s19 = smov 128   ;;  %s1514_s20 = smov 8  }
  0x10   :  { %21 = dma.hbm_to_vmem [thread:$0]  %s1831_s1, 4352, %s16_s10, [#allocation3], %s1513_s19, %s1513_s19, %s1514_s20  }
  0x11   :  { %1510 = dma.done.wait [#allocation3], 4352  }
  0x12   :  { %1511 = vsyncadd [#allocation3], 4294962944  ;;  %vm48_vm0 = vcmask 1043456   ;;  %vm35_vm1 = vcmask 31744   ;;  %v29_v0 = vld [vmem:[#allocation2] sm:$0xf]  ;;  %v142_v7 = vlaneseq }
  0x13   :  { %v25_v1 = vld [vmem:[%s1830_s0] sm:$0xff]  ;;  %v26_v2 = vld [vmem:[%s1830_s0 + $0x8] sm:$0xff]  ;;  %1347 = vmatprep.subr.msk.mxu0 %vm48_vm0, %v29_v0  ;;  %v27_v3 = vld [vmem:[%s1830_s0 + $0x10] sm:$0xff]  ;;  %vm222_vm7 = vcmask 130048   ;;  %vm217_vm8 = vcmask 64512   ;;  %vm227_vm9 = vcmask 195584  }
  0x14   :  { %1349 = vmatprep.mubr.msk.f32.mxu0 %vm35_vm1, %v25_v1  ;;  %1348 = vmatpush3.msk.msra.mxu0 %vm48_vm0, %v29_v0  ;;  %v28_v4 = vld [vmem:[%s1830_s0 + $0x18] sm:$0xff]  ;;  %v137_v5 = vld [vmem:[#allocation2 + $0x10] sm:$0xff]  ;;  %v1259_v9 = vld [vmem:[#allocation2 + $0x8] ss:$0 sm:$0xff]  ;;  %v1560_v11 = vshrl.u32 %v142_v7, 7  ;;  %s1515_s0 = smov 16  }
  0x15   :  { %1350 = vmatmul.mubr.msk.f32.vlgmr.msra.gmra.mrb[0].mxu0 %vm35_vm1, %v26_v2  ;;  %v138_v6 = vld [vmem:[#allocation2 + $0x18] sm:$0xff]  ;;  %v139_v10 = vld [vmem:[#allocation2 + $0x20] sm:$0xff]  ;;  %vm557_vm11 = vcmask 261120  }
  0x16   :  { %1352 = vmatprep.mubr.msk.f32.mxu0 %vm35_vm1, %v27_v3  ;;  %v1442_v8 = vpack.c.bf16 %v138_v6, %v137_v5  ;;  %vm176_vm2 = vcmp.lt.s32.totalorder %v1560_v11, 7  ;;  %v1571_v17 = vadd.s32 8, %v1560_v11  ;;  %v146_v25 = vadd.s32 24, %v1560_v11  ;;  %v345_v3 = vld [vmem:[#allocation2 + $0x38] sm:$0xff]  ;;  %v1269_v6 = vld [vmem:[#allocation2 + $0x28] ss:$0 sm:$0xff] }
  0x17   :  { %v147_v37 = vand.u32 15, %v1560_v11  ;;  %v145_v39 = vadd.s32 16, %v1560_v11  ;;  %vm159_vm5 = vcmp.lt.s32.totalorder %v1560_v11, 1  ;;  %v549_v51 = vmul.u32 2, %v1560_v11 }
  0x18   :  { %1443 = vmatprep.subr.bf16.mxu1 %v1442_v8  ;;  %v148_v24 = vand.u32 15, %v1571_v17  ;;  %v150_v30 = vand.u32 15, %v146_v25 }
  0x19   :  { %1353 = vmatmul.mubr.msk.f32.gmra.mrb[2].mxu0 %vm35_vm1, %v28_v4  ;;  %1445 = vmatpush3.bf16.msra.mxu1 %v1442_v8  ;;  %vm1617_vm6 = vcmp.eq.s32.totalorder %v147_v37, 0  ;;  %v149_v43 = vand.u32 15, %v145_v39  ;;  %v346_v4 = vld [vmem:[#allocation2 + $0x40] sm:$0xff]  ;;  %v1270_v8 = vld [vmem:[#allocation2 + $0x30] ss:$0 sm:$0xff] }
  0x1a   :  { %1359 = vmatprep.subr.mxu1 %v139_v10  ;;  %vm1591_vm3 = vcmp.eq.s32.totalorder %v148_v24, 15  ;;  %vm1603_vm4 = vcmp.eq.s32.totalorder %v150_v30, 15  ;;  %v1446_v5 = vpack.c.bf16 %v346_v4, %v345_v3 }
  0x1b   :  { %vm1630_vm10 = vcmp.eq.s32.totalorder %v149_v43, 0 }
  0x1c   :  { %1447 = vmatprep.subr.bf16.mxu0 %v1446_v5 }
  0x1d   :  { %1360 = vmatpush3.msra.mxu1 %v139_v10  ;;  %1449 = vmatpush3.bf16.msra.mxu0 %v1446_v5  ;;  %v347_v10 = vld [vmem:[#allocation2 + $0x48] sm:$0xff]  ;;  %v1696_v5 = vand.u32 127, %v142_v7 }
  0x1e   :  { %1371 = vmatprep.subr.mxu0 %v347_v10 }
  0x1f   :  { %vm551_vm12 = vcmp.eq.s32.totalorder %v1696_v5, %v549_v51 }
  0x21   :  { %1372 = vmatpush3.msra.mxu0 %v347_v10  ;;  %v1276_v10 = vld [vmem:[#allocation2 + $0x58] ss:$0 sm:$0xff] }
  0xe8   :  { %v1351_v12 = vpop.f32.mrb[0].mxu0 }
  0xe9   :  { %v1562_v13 = vadd.f32 %v1351_v12, %v1259_v9  ;;  %v118_v14 = vpop.f32.mrb[1].mxu0 }
  0xea   :  { %v1564_v15 = vadd.f32 %v1259_v9, %v118_v14 }
  0xeb   :  { %191 = vrot.lane.b32.xlu0 %v1562_v13, %s1514_s20  ;;  %v173_v16 = vrot.slane %v1562_v13, 1  ;;  %v156_v49 = vrot.slane %v1562_v13, 7 }
  0xec   :  { %v1354_v18 = vpop.f32.mrb[2].mxu0  ;;  %v172_v19 = vrot.slane %v1564_v15, 1  ;;  %v155_v38 = vrot.slane %v1564_v15, 7 }
  0xed   :  { %v128_v20 = vpop.f32.mrb[3].mxu0  ;;  %v1578_v23 = vadd.f32 %v1354_v18, %v1259_v9 }
  0xee   :  { %v1574_v21 = vadd.f32 %v1259_v9, %v128_v20  ;;  %v179_v22 = vsel %vm176_vm2, %v172_v19, %v173_v16  ;;  %v162_v55 = vsel %vm159_vm5, %v155_v38, %v156_v49 }
  0xef   :  { %189 = vrot.lane.b32.xlu0 %v1564_v15, %s1514_s20  ;;  %205 = vrot.lane.b32.xlu1 %v179_v22, %s1515_s0  ;;  %v175_v27 = vrot.slane %v1578_v23, 1  ;;  %v158_v36 = vrot.slane %v1578_v23, 7 }
  0xf0   :  { %v174_v26 = vrot.slane %v1574_v21, 1  ;;  %v157_v44 = vrot.slane %v1574_v21, 7 }
  0xf1   :  { %v180_v34 = vsel %vm176_vm2, %v175_v27, %v172_v19  ;;  %v163_v42 = vsel %vm159_vm5, %v158_v36, %v155_v38 }
  0xf2   :  { %v178_v29 = vsel %vm176_vm2, %v173_v16, %v174_v26  ;;  %v177_v31 = vsel %vm176_vm2, %v174_v26, %v175_v27  ;;  %v184_v35 = vsel %vm1603_vm4, 0.0, %v180_v34  ;;  %v164_v46 = vsel %vm1617_vm6, 0.0, %v163_v42 }
  0xf3   :  { %193 = vrot.lane.b32.xlu0 %v1574_v21, %s1514_s20  ;;  %195 = vrot.lane.b32.xlu1 %v1578_v23, %s1514_s20  ;;  %v182_v32 = vsel %vm1591_vm3, 0.0, %v178_v29  ;;  %v161_v52 = vsel %vm159_vm5, %v156_v49, %v157_v44  ;;  %v160_v63 = vsel %vm159_vm5, %v157_v44, %v158_v36 }
  0xf4   :  { %v166_v56 = vsel %vm1630_vm10, 0.0, %v161_v52 }
  0xf7   :  { %209 = vrot.lane.b32.xlu0 %v177_v31, %s1515_s0  ;;  %207 = vrot.lane.b32.xlu1 %v182_v32, %s1515_s0 }
  0xfb   :  { %211 = vrot.lane.b32.xlu1 %v184_v35, %s1515_s0 }
 0x15d   :  { %v192_v40 = vpop.permute.xlu0 %191 }
 0x15e   :  { %v219_v57 = vsel %vm217_vm8, %v162_v55, %v192_v40 }
 0x161   :  { %v190_v45 = vpop.permute.xlu0 %189  ;;  %v206_v47 = vpop.permute.xlu1 %205 }
 0x162   :  { %v218_v48 = vsel %vm217_vm8, %v164_v46, %v190_v45 }
 0x163   :  { %v223_v50 = vsel %vm222_vm7, %v218_v48, %v206_v47 }
 0x164   :  { %1361 = vmatprep.mubr.msk.f32.mxu1 %vm227_vm9, %v223_v50 }
 0x165   :  { %v194_v53 = vpop.permute.xlu0 %193  ;;  %v196_v54 = vpop.permute.xlu1 %195 }
 0x166   :  { %v220_v58 = vsel %vm217_vm8, %v166_v56, %v194_v53  ;;  %v221_v0 = vsel %vm217_vm8, %v160_v63, %v196_v54 }
 0x169   :  { %v210_v59 = vpop.permute.xlu0 %209  ;;  %v208_v60 = vpop.permute.xlu1 %207 }
 0x16a   :  { %v225_v61 = vsel %vm222_vm7, %v220_v58, %v210_v59  ;;  %v224_v62 = vsel %vm222_vm7, %v219_v57, %v208_v60 }
 0x16b   :  { %1362 = vmatmul.mubr.msk.f32.vlgmr.msra.gmra.mrb[0].mxu1 %vm227_vm9, %v224_v62 }
 0x16c   :  { %1364 = vmatprep.mubr.msk.f32.mxu1 %vm227_vm9, %v225_v61 }
 0x16d   :  { %v212_v1 = vpop.permute.xlu1 %211 }
 0x16e   :  { %v226_v2 = vsel %vm222_vm7, %v221_v0, %v212_v1 }
 0x16f   :  { %1365 = vmatmul.mubr.msk.f32.gmra.mrb[2].mxu1 %vm227_vm9, %v226_v2 }
 0x23e   :  { %v1363_v9 = vpop.f32.mrb[0].mxu1 }
 0x23f   :  { %v330_v12 = vmul.f32 %v1363_v9, %v1269_v6  ;;  %v306_v14 = vpop.f32.mrb[1].mxu1  ;;  %v1275_v9 = vld [vmem:[#allocation2 + $0x50] ss:$0 sm:$0xff] }
 0x240   :  { %v329_v16 = vmul.f32 %v1269_v6, %v306_v14 }
 0x241   :  { %v338_v18 = vadd.f32 %v1270_v8, %v330_v12 }
 0x242   :  { %v337_v19 = vadd.f32 %v1270_v8, %v329_v16  ;;  %v1366_v20 = vpop.f32.mrb[2].mxu1 }
 0x243   :  { %v342_v22 = vmax.f32 %v338_v18, 0.0  ;;  %v332_v24 = vmul.f32 %v1366_v20, %v1269_v6  ;;  %v316_v25 = vpop.f32.mrb[3].mxu1 }
 0x244   :  { %v341_v26 = vmax.f32 %v337_v19, 0.0  ;;  %v331_v27 = vmul.f32 %v1269_v6, %v316_v25  ;;  %v1516_v6 = vmov 0.0  }
 0x245   :  { %v351_v29 = vrot.slane %v342_v22, 7  ;;  %v340_v30 = vadd.f32 %v1270_v8, %v332_v24  ;;  %380 = vrot.lane.b32.xlu1 %v342_v22, %s1514_s20  ;;  %v363_v31 = vrot.slane %v342_v22, 1 }
 0x246   :  { %v350_v32 = vrot.slane %v341_v26, 7  ;;  %v339_v34 = vadd.f32 %v1270_v8, %v331_v27  ;;  %378 = vrot.lane.b32.xlu0 %v341_v26, %s1514_s20  ;;  %v362_v35 = vrot.slane %v341_v26, 1  ;;  %v1277_v8 = vsel %vm551_vm12, 1.0, %v1516_v6 }
 0x247   :  { %v344_v36 = vmax.f32 %v340_v30, 0.0  ;;  %1387 = vmatprep.mubr.msk.f32.mxu1 %vm557_vm11, %v1277_v8 }
 0x248   :  { %v343_v37 = vmax.f32 %v339_v34, 0.0  ;;  %v368_v38 = vsel %vm176_vm2, %v362_v35, %v363_v31  ;;  %v356_v39 = vsel %vm159_vm5, %v350_v32, %v351_v29 }
 0x249   :  { %v353_v40 = vrot.slane %v344_v36, 7  ;;  %384 = vrot.lane.b32.xlu1 %v344_v36, %s1514_s20  ;;  %v365_v42 = vrot.slane %v344_v36, 1 }
 0x24a   :  { %v352_v43 = vrot.slane %v343_v37, 7  ;;  %394 = vrot.lane.b32.xlu0 %v368_v38, %s1515_s0  ;;  %v364_v44 = vrot.slane %v343_v37, 1 }
 0x24b   :  { %v369_v45 = vsel %vm176_vm2, %v365_v42, %v362_v35  ;;  %v357_v46 = vsel %vm159_vm5, %v353_v40, %v350_v32 }
 0x24c   :  { %v367_v47 = vsel %vm176_vm2, %v363_v31, %v364_v44  ;;  %v366_v48 = vsel %vm176_vm2, %v364_v44, %v365_v42  ;;  %v354_v50 = vsel %vm159_vm5, %v352_v43, %v353_v40  ;;  %v355_v52 = vsel %vm159_vm5, %v351_v29, %v352_v43 }
 0x24d   :  { %v371_v49 = vsel %vm1591_vm3, 0.0, %v367_v47  ;;  %v373_v53 = vsel %vm1603_vm4, 0.0, %v369_v45  ;;  %v358_v55 = vsel %vm1617_vm6, 0.0, %v357_v46  ;;  %v360_v41 = vsel %vm1630_vm10, 0.0, %v355_v52  ;;  %v639_v52 = vld [vmem:[#allocation2 + $0x60] sm:$0xff] }
 0x24e   :  { %382 = vrot.lane.b32.xlu0 %v343_v37, %s1514_s20  ;;  %396 = vrot.lane.b32.xlu1 %v371_v49, %s1515_s0  ;;  %v550_v49 = vmul.u32 2, %v1571_v17  ;;  %vm1518_vm3 = vmmov 0   ;;  %vm919_vm4 = vcmp.lt.s32.totalorder %v1560_v11, 6 }
 0x250   :  { %vm552_vm13 = vcmp.eq.s32.totalorder %v1696_v5, %v550_v49 }
 0x252   :  { %400 = vrot.lane.b32.xlu1 %v373_v53, %s1515_s0  ;;  %398 = vrot.lane.b32.xlu0 %v366_v48, %s1515_s0  ;;  %v640_v53 = vld [vmem:[#allocation2 + $0x68] sm:$0xff] }
 0x2b7   :  { %v381_v54 = vpop.permute.xlu1 %380 }
 0x2b8   :  { %v379_v28 = vpop.permute.xlu0 %378  ;;  %v407_v33 = vsel %vm217_vm8, %v356_v39, %v381_v54  ;;  %v1458_v54 = vpack.c.bf16 %v640_v53, %v639_v52 }
 0x2b9   :  { %v406_v57 = vsel %vm217_vm8, %v358_v55, %v379_v28  ;;  %v641_v28 = vld [vmem:[#allocation2 + $0x70] sm:$0xff]  ;;  %v645_v55 = vand.u32 7, %v1571_v17 }
 0x2ba   :  { %1459 = vmatprep.subr.bf16.mxu0 %v1458_v54 }
 0x2bb   :  { %v385_v56 = vpop.permute.xlu1 %384  ;;  %vm1732_vm14 = vcmp.eq.s32.totalorder %v645_v55, 7  ;;  %vm1754_vm0 = vcmp.eq.s32.totalorder %v645_v55, 0 }
 0x2bc   :  { %v395_v58 = vpop.permute.xlu0 %394  ;;  %v409_v63 = vsel %vm217_vm8, %v354_v50, %v385_v56  ;;  %v1278_v50 = vsel %vm552_vm13, 1.0, %v1516_v6  ;;  %v644_v56 = vand.u32 7, %v1560_v11 }
 0x2bd   :  { %v410_v59 = vsel %vm222_vm7, %v406_v57, %v395_v58 }
 0x2be   :  { %1373 = vmatprep.mubr.msk.f32.mxu0 %vm227_vm9, %v410_v59  ;;  %vm1736_vm15 = vcmp.eq.s32.totalorder %v644_v56, 7  ;;  %vm1758_vm1 = vcmp.eq.s32.totalorder %v644_v56, 0  ;;  %v1517_v56 = vmov 0.0|0.0  }
 0x2c0   :  { %v383_v60 = vpop.permute.xlu0 %382  ;;  %v397_v61 = vpop.permute.xlu1 %396 }
 0x2c1   :  { %v411_v62 = vsel %vm222_vm7, %v407_v33, %v397_v61  ;;  %v408_v0 = vsel %vm217_vm8, %v360_v41, %v383_v60 }
 0x2c2   :  { %1374 = vmatmul.mubr.msk.f32.vlgmr.msra.gmra.mrb[4].mxu0 %vm227_vm9, %v411_v62 }
 0x2c3   :  { %1461 = vmatpush3.bf16.msra.mxu0 %v1458_v54 }
 0x2c4   :  { %v401_v1 = vpop.permute.xlu1 %400  ;;  %v399_v2 = vpop.permute.xlu0 %398  ;;  %1394 = vmatprep.subr.mxu0 %v641_v28 }
 0x2c5   :  { %v413_v3 = vsel %vm222_vm7, %v409_v63, %v401_v1  ;;  %v412_v4 = vsel %vm222_vm7, %v408_v0, %v399_v2 }
 0x2c6   :  { %1376 = vmatprep.mubr.msk.f32.mxu0 %vm227_vm9, %v412_v4 }
 0x2c7   :  { %1377 = vmatmul.mubr.msk.f32.gmra.mrb[6].mxu0 %vm227_vm9, %v413_v3 }
 0x2c8   :  { %1395 = vmatpush3.msra.mxu0 %v641_v28 }
 0x2c9   :  { %1466 = vmatprep.subr.bf16.mxu0 %v1517_v56 }
 0x395   :  { %v1375_v12 = vpop.f32.mrb[4].mxu0 }
 0x396   :  { %v516_v14 = vmul.f32 %v1375_v12, %v1275_v9  ;;  %v492_v16 = vpop.f32.mrb[5].mxu0 }
 0x397   :  { %v515_v18 = vmul.f32 %v1275_v9, %v492_v16 }
 0x398   :  { %v524_v19 = vadd.f32 %v1276_v10, %v516_v14 }
 0x399   :  { %v523_v20 = vadd.f32 %v1276_v10, %v515_v18 }
 0x39a   :  { %v528_v7 = vadd.f32 %v524_v19, %v1562_v13  ;;  %v1378_v22 = vpop.f32.mrb[6].mxu0 }
 0x39b   :  { %v527_v24 = vadd.f32 %v523_v20, %v1564_v15  ;;  %v518_v25 = vmul.f32 %v1378_v22, %v1275_v9  ;;  %v502_v26 = vpop.f32.mrb[7].mxu0  ;;  %v777_v22 = vld [vmem:[#allocation2 + $0x88] sm:$0xff] }
 0x39c   :  { %v532_v27 = vmax.f32 %v528_v7, 0.0  ;;  %v517_v29 = vmul.f32 %v1275_v9, %v502_v26  ;;  %v1283_v26 = vld [vmem:[#allocation2 + $0x78] ss:$0 sm:$0xff] }
 0x39d   :  { %v531_v30 = vmax.f32 %v527_v24, 0.0  ;;  %v526_v31 = vadd.f32 %v1276_v10, %v518_v25  ;;  %v778_v24 = vld [vmem:[#allocation2 + $0x90] sm:$0xff] }
 0x39e   :  { %v536_v32 = vrot.slane %v532_v27, 1  ;;  %v525_v34 = vadd.f32 %v1276_v10, %v517_v29  ;;  %v1462_v25 = vpack.c.bf16 %v778_v24, %v777_v22  ;;  %v1284_v29 = vld [vmem:[#allocation2 + $0x80] ss:$0 sm:$0xff]  ;;  %v931_v24 = vmul.u32 8, %v1560_v11 }
 0x39f   :  { %v535_v35 = vrot.slane %v531_v30, 1  ;;  %v530_v36 = vadd.f32 %v526_v31, %v1578_v23 }
 0x3a0   :  { %v529_v37 = vadd.f32 %v525_v34, %v1574_v21 }
 0x3a1   :  { %v534_v38 = vmax.f32 %v530_v36, 0.0  ;;  %v541_v13 = vsel %vm176_vm2, %v535_v35, %v536_v32 }
 0x3a2   :  { %v533_v39 = vmax.f32 %v529_v37, 0.0  ;;  %v543_v40 = vmax.f32 %v531_v30, %v541_v13 }
 0x3a3   :  { %v538_v15 = vrot.slane %v534_v38, 1 }
 0x3a4   :  { %v537_v42 = vrot.slane %v533_v39, 1 }
 0x3a5   :  { %v542_v43 = vsel %vm176_vm2, %v538_v15, %v535_v35 }
 0x3a6   :  { %v540_v44 = vsel %vm176_vm2, %v536_v32, %v537_v42  ;;  %v539_v45 = vsel %vm176_vm2, %v537_v42, %v538_v15  ;;  %v546_v23 = vmax.f32 %v534_v38, %v542_v43 }
 0x3a7   :  { %v544_v46 = vmax.f32 %v532_v27, %v540_v44  ;;  %v545_v21 = vmax.f32 %v533_v39, %v539_v45  ;;  %v779_v27 = vld [vmem:[#allocation2 + $0x98] sm:$0xff] }
 0x3a9   :  { %v1450_v47 = vpack.c.bf16 %v544_v46, %v543_v40  ;;  %v1454_v48 = vpack.c.bf16 %v546_v23, %v545_v21 }
 0x3ab   :  { %1451 = vmatprep.subr.bf16.mxu1 %v1450_v47 }
 0x3ac   :  { %1453 = vmatpush3.bf16.msra.mxu1 %v1450_v47 }
 0x3ad   :  { %1455 = vmatprep.subr.bf16.mxu1 %v1454_v48 }
 0x3b0   :  { %1457 = vmatpush3.bf16.msra.mxu1 %v1454_v48 }
 0x3b1   :  { %1463 = vmatprep.subr.bf16.mxu1 %v1462_v25 }
 0x3b3   :  { %1388 = vmatmul.mubr.msk.f32.vlgmr.msra.gmra.mrb[4].mxu1 %vm557_vm11, %v1278_v50 }
 0x3b4   :  { %1465 = vmatpush3.bf16.msra.mxu1 %v1462_v25 }
 0x3b5   :  { %1403 = vmatprep.subr.mxu1 %v779_v27 }
 0x3b8   :  { %1404 = vmatpush3.msra.mxu1 %v779_v27 }
 0x3b9   :  { %1415 = vmatprep.subr.mxu1 %v1516_v6 }
 0x486   :  { %v1720_v57 = vpop.f32.mrb[4].mxu1 }
 0x487   :  { %v649_v58 = vrot.slane %v1720_v57, 7  ;;  %v657_v59 = vrot.slane %v1720_v57, 1  ;;  %666 = vrot.lane.b32.xlu1 %v1720_v57, %s1514_s20  ;;  %v1726_v33 = vpop.f32.mrb[5].mxu1 }
 0x488   :  { %v648_v60 = vrot.slane %v1726_v33, 7  ;;  %v656_v61 = vrot.slane %v1726_v33, 1  ;;  %664 = vrot.lane.b32.xlu0 %v1726_v33, %s1514_s20 }
 0x48a   :  { %v659_v41 = vsel %vm176_vm2, %v657_v59, %v656_v61  ;;  %v658_v63 = vsel %vm176_vm2, %v656_v61, %v657_v59  ;;  %v650_v0 = vsel %vm159_vm5, %v648_v60, %v649_v58  ;;  %v651_v1 = vsel %vm159_vm5, %v649_v58, %v648_v60  ;;  %v1008_v58 = vld [vmem:[#allocation2 + $0xb0] sm:$0xff]  ;;  %v1287_v59 = vld [vmem:[#allocation2 + $0xa0] ss:$0 sm:$0xff]  ;;  %v1288_v60 = vld [vmem:[#allocation2 + $0xa8] ss:$0 sm:$0xff] }
 0x48b   :  { %v661_v2 = vsel %vm1732_vm14, 0.0, %v659_v41  ;;  %v660_v3 = vsel %vm1736_vm15, 0.0, %v658_v63  ;;  %v653_v10 = vsel %vm1754_vm0, 0.0, %v650_v0  ;;  %v652_v12 = vsel %vm1758_vm1, 0.0, %v651_v1 }
 0x48c   :  { %674 = vrot.lane.b32.xlu1 %v661_v2, %s1515_s0  ;;  %672 = vrot.lane.b32.xlu0 %v660_v3, %s1515_s0 }
 0x4f9   :  { %v667_v4 = vpop.permute.xlu1 %666 }
 0x4fa   :  { %v665_v9 = vpop.permute.xlu0 %664  ;;  %v679_v14 = vsel %vm217_vm8, %v653_v10, %v667_v4 }
 0x4fb   :  { %v678_v16 = vsel %vm217_vm8, %v652_v12, %v665_v9 }
 0x4fe   :  { %v675_v18 = vpop.permute.xlu1 %674  ;;  %v673_v19 = vpop.permute.xlu0 %672 }
 0x4ff   :  { %v681_v20 = vsel %vm222_vm7, %v679_v14, %v675_v18  ;;  %v680_v7 = vsel %vm222_vm7, %v678_v16, %v673_v19 }
 0x500   :  { %1396 = vmatprep.mubr.msk.f32.mxu0 %vm227_vm9, %v680_v7 }
 0x501   :  { %1397 = vmatmul.mubr.msk.f32.vlgmr.msra.gmra.mrb[8].mxu0 %vm227_vm9, %v681_v20 }
 0x502   :  { %1412 = vmatprep.mubr.msk.f32.mxu0 %vm1518_vm3, %v1516_v6 }
 0x5d4   :  { %v1398_v30 = vpop.f32.mrb[8].mxu0 }
 0x5d5   :  { %v768_v31 = vmul.f32 %v1398_v30, %v1283_v26  ;;  %v754_v32 = vpop.f32.mrb[9].mxu0 }
 0x5d6   :  { %v767_v34 = vmul.f32 %v1283_v26, %v754_v32  ;;  %v1088_v32 = vld [vmem:[#allocation2 + $0xc0] sm:$0xff] }
 0x5d7   :  { %v774_v35 = vadd.f32 %v1284_v29, %v768_v31 }
 0x5d8   :  { %v773_v36 = vadd.f32 %v1284_v29, %v767_v34  ;;  %v1089_v34 = vld [vmem:[#allocation2 + $0xc8] sm:$0xff] }
 0x5d9   :  { %v776_v37 = vmax.f32 %v774_v35, 0.0 }
 0x5da   :  { %v775_v38 = vmax.f32 %v773_v36, 0.0 }
 0x5db   :  { %v783_v13 = vrot.slane %v776_v37, 7  ;;  %798 = vrot.lane.b32.xlu1 %v776_v37, %s1514_s20  ;;  %v789_v39 = vrot.slane %v776_v37, 1  ;;  %v1091_v37 = vld [vmem:[#allocation2 + $0xd8] sm:$0xff] }
 0x5dc   :  { %v782_v40 = vrot.slane %v775_v38, 7  ;;  %796 = vrot.lane.b32.xlu0 %v775_v38, %s1514_s20  ;;  %v788_v15 = vrot.slane %v775_v38, 1 }
 0x5de   :  { %v791_v42 = vsel %vm176_vm2, %v789_v39, %v788_v15  ;;  %v790_v43 = vsel %vm176_vm2, %v788_v15, %v789_v39  ;;  %v784_v44 = vsel %vm159_vm5, %v782_v40, %v783_v13  ;;  %v785_v45 = vsel %vm159_vm5, %v783_v13, %v782_v40  ;;  %v1171_v13 = vld [vmem:[#allocation2 + $0xe8] sm:$0xff]  ;;  %v1172_v39 = vld [vmem:[#allocation2 + $0xf0] sm:$0xff]  ;;  %v1291_v15 = vld [vmem:[#allocation2 + $0xb8] ss:$0 sm:$0xff] }
 0x5df   :  { %v793_v23 = vsel %vm1732_vm14, 0.0, %v791_v42  ;;  %v792_v46 = vsel %vm1736_vm15, 0.0, %v790_v43  ;;  %v787_v48 = vsel %vm1754_vm0, 0.0, %v784_v44  ;;  %v786_v49 = vsel %vm1758_vm1, 0.0, %v785_v45 }
 0x5e0   :  { %806 = vrot.lane.b32.xlu1 %v793_v23, %s1515_s0  ;;  %804 = vrot.lane.b32.xlu0 %v792_v46, %s1515_s0  ;;  %vm926_vm5 = vcmp.lt.s32.totalorder %v1560_v11, 4  ;;  %v1470_v11 = vpack.c.bf16 %v1089_v34, %v1088_v32  ;;  %v1476_v40 = vpack.c.bf16 %v1172_v39, %v1171_v13  ;;  %v1173_v23 = vld [vmem:[#allocation2 + $0xf8] sm:$0xff]  ;;  %v1174_v46 = vld [vmem:[#allocation2 + $0x100] sm:$0xff] }
 0x64d   :  { %v799_v21 = vpop.permute.xlu1 %798 }
 0x64e   :  { %v797_v47 = vpop.permute.xlu0 %796  ;;  %v811_v50 = vsel %vm217_vm8, %v787_v48, %v799_v21  ;;  %v1293_v21 = vld [vmem:[#allocation2 + $0xe0] ss:$0 sm:$0xff] }
 0x64f   :  { %v810_v52 = vsel %vm217_vm8, %v786_v49, %v797_v47 }
 0x652   :  { %v807_v53 = vpop.permute.xlu1 %806  ;;  %v805_v54 = vpop.permute.xlu0 %804 }
 0x653   :  { %v813_v28 = vsel %vm222_vm7, %v811_v50, %v807_v53  ;;  %v812_v55 = vsel %vm222_vm7, %v810_v52, %v805_v54  ;;  %v1295_v52 = vld [vmem:[#allocation2 + $0x108] ss:$0 sm:$0xff] }
 0x654   :  { %1405 = vmatprep.mubr.msk.f32.mxu1 %vm227_vm9, %v812_v55 }
 0x655   :  { %1406 = vmatmul.mubr.msk.f32.vlgmr.msra.gmra.mrb[6].mxu1 %vm227_vm9, %v813_v28 }
 0x656   :  { %1417 = vmatprep.mubr.msk.f32.mxu1 %vm1518_vm3, %v1516_v6  ;;  %1416 = vmatpush3.msra.mxu1 %v1008_v58 }
 0x657   :  { %1475 = vmatprep.subr.bf16.mxu1 %v1517_v56 }
 0x728   :  { %v1407_v61 = vpop.f32.mrb[6].mxu1 }
 0x729   :  { %v900_v17 = vmul.f32 %v1407_v61, %v1287_v59  ;;  %v886_v62 = vpop.f32.mrb[7].mxu1 }
 0x72a   :  { %v899_v41 = vmul.f32 %v1287_v59, %v886_v62 }
 0x72b   :  { %v906_v63 = vadd.f32 %v1288_v60, %v900_v17 }
 0x72c   :  { %v905_v0 = vadd.f32 %v1288_v60, %v899_v41 }
 0x72d   :  { %v908_v1 = vadd.f32 %v1720_v57, %v906_v63 }
 0x72e   :  { %v907_v2 = vadd.f32 %v905_v0, %v1726_v33 }
 0x72f   :  { %v910_v3 = vmax.f32 %v908_v1, 0.0 }
 0x730   :  { %v909_v4 = vmax.f32 %v907_v2, 0.0 }
 0x731   :  { %v912_v51 = vrot.slane %v910_v3, 1 }
 0x732   :  { %v911_v8 = vrot.slane %v909_v4, 1 }
 0x734   :  { %v913_v9 = vsel %vm176_vm2, %v911_v8, %v912_v51  ;;  %v914_v10 = vsel %vm176_vm2, %v912_v51, %v911_v8  ;;  %vm932_vm2 = vcmp.eq.s32.totalorder %v1696_v5, %v931_v24  ;;  %v1090_v5 = vld [vmem:[#allocation2 + $0xd0] sm:$0xff] }
 0x735   :  { %v915_v12 = vmax.f32 %v909_v4, %v913_v9  ;;  %v916_v14 = vmax.f32 %v910_v3, %v914_v10  ;;  %v1289_v31 = vsel %vm932_vm2, 1.0, %v1516_v6  ;;  %v1473_v38 = vpack.c.bf16 %v1091_v37, %v1090_v5 }
 0x737   :  { %v917_v16 = vrot.slane %v915_v12, 2  ;;  %v918_v18 = vrot.slane %v916_v14, 2 }
 0x739   :  { %v920_v19 = vsel %vm919_vm4, %v917_v16, %v918_v18  ;;  %v921_v57 = vsel %vm919_vm4, %v918_v18, %v917_v16 }
 0x73a   :  { %v922_v20 = vmax.f32 %v915_v12, %v920_v19  ;;  %v923_v33 = vmax.f32 %v916_v14, %v921_v57 }
 0x73c   :  { %v924_v7 = vrot.slane %v922_v20, 4  ;;  %v925_v22 = vrot.slane %v923_v33, 4 }
 0x73e   :  { %v927_v25 = vsel %vm926_vm5, %v924_v7, %v925_v22  ;;  %v928_v26 = vsel %vm926_vm5, %v925_v22, %v924_v7 }
 0x73f   :  { %v929_v27 = vmax.f32 %v922_v20, %v927_v25  ;;  %v930_v29 = vmax.f32 %v923_v33, %v928_v26 }
 0x741   :  { %v1467_v30 = vpack.c.bf16 %v930_v29, %v929_v27 }
 0x743   :  { %1468 = vmatpush3.bf16.msra.mxu0 %v1467_v30 }
 0x744   :  { %1469 = vmatprep.subr.bf16.mxu0 %v1517_v56 }
 0x746   :  { %1413 = vmatmul.mubr.msk.f32.vlgmr.msra.gmra.mrb[10].mxu0 %vm222_vm7, %v1289_v31 }
 0x747   :  { %1428 = vmatprep.mubr.msk.f32.mxu0 %vm1518_vm3, %v1516_v6  ;;  %1471 = vmatpush3.bf16.msra.mxu0 %v1470_v11 }
 0x748   :  { %1472 = vmatprep.subr.bf16.mxu0 %v1517_v56 }
 0x74b   :  { %1474 = vmatpush3.bf16.msra.mxu0 %v1473_v38 }
 0x819   :  { %v1004_v35 = vpop.f32.mrb[10].mxu0 }
 0x81a   :  { %v1414_v36 = vpop.f32.mrb[11].mxu0  ;;  %1418 = vmatmul.mubr.msk.f32.vlgmr.msra.gmra.mrb[8].mxu1 %vm217_vm8, %v1004_v35 }
 0x81b   :  { %1439 = vmatprep.mubr.msk.f32.mxu1 %vm1518_vm3, %v1516_v6  ;;  %1477 = vmatpush3.bf16.msra.mxu1 %v1476_v40  ;;  %v1479_v6 = vpack.c.bf16 %v1174_v46, %v1173_v23 }
 0x81c   :  { %1478 = vmatprep.subr.bf16.mxu1 %v1517_v56 }
 0x81f   :  { %1480 = vmatpush3.bf16.msra.mxu1 %v1479_v6 }
 0x8ed   :  { %v1083_v42 = vpop.f32.mrb[8].mxu1 }
 0x8ee   :  { %v1084_v43 = vadd.f32 %v1291_v15, %v1083_v42  ;;  %v1419_v44 = vpop.f32.mrb[9].mxu1 }
 0x8f0   :  { %v1087_v45 = vmax.f32 %v1084_v43, 0.0 }
 0x8f2   :  { %1429 = vmatmul.mubr.msk.f32.vlgmr.msra.gmra.mrb[12].mxu0 %vm557_vm11, %v1087_v45 }
 0x9c5   :  { %v1166_v47 = vpop.f32.mrb[12].mxu0 }
 0x9c6   :  { %v1167_v48 = vadd.f32 %v1293_v21, %v1166_v47  ;;  %v1430_v49 = vpop.f32.mrb[13].mxu0 }
 0x9c8   :  { %v1170_v50 = vmax.f32 %v1167_v48, 0.0 }
 0x9ca   :  { %1440 = vmatmul.mubr.msk.f32.vlgmr.msra.gmra.mrb[10].mxu1 %vm557_vm11, %v1170_v50 }
 0xa9d   :  { %v1249_v53 = vpop.f32.mrb[10].mxu1 }
 0xa9e   :  { %v1250_v54 = vadd.f32 %v1295_v52, %v1249_v53  ;;  %v1441_v28 = vpop.f32.mrb[11].mxu1 }
 0xaa0   :  { %1253 = vst [vmem:[%s1832_s2] sm:$0x3] %v1250_v54 }
 0xaa1   :  { %1258 = vsyncpa [#allocation3], 1 }

</bundles_post_ra>
